<compile_context>
chip_gen: v6e
topology: v6e:2x2x1
jax: 0.10.0
libtpu: 0.0.40
codegen_flags: <defaults>
</compile_context>

<pallas_src>
import functools

import jax
import jax.numpy as jnp
from jax.experimental import pallas as pl
from jax.experimental.pallas import tpu as pltpu


# ---------------------------------------------------------------------------
# Kernel: fused global-average-pool -> Linear -> ReLU -> Linear
# ---------------------------------------------------------------------------
def head_kernel(x_ref, w1_ref, b1_ref, w2_ref, b2_ref, o_ref, *,
                inv_hw, channels_last):
    """
    x_ref : (B_tile, C, HW) if not channels_last (NCHW backbone output)
            (B_tile, HW, C) if channels_last     (NHWC / TPU-conv-native)
    w1_ref: (C, HIDDEN)
    b1_ref: (1, HIDDEN)
    w2_ref: (HIDDEN, N_PAD)   classes zero-padded to a 128-lane multiple
    b2_ref: (1, N_PAD)
    o_ref : (B_tile, N_PAD)   float32 logits (padded, unmasked vst)
    """
    # Cast up front: bf16 feature maps work on v5e (no bf16 VPU) and the
    # spatial sum accumulates in f32.
    x = x_ref[...].astype(jnp.float32)
    spatial_axis = -2 if channels_last else -1
    # AdaptiveAvgPool2d((1,1)) + flatten == mean over spatial positions:
    # one reduction + a single compile-time-constant scalar multiply.
    feat = jnp.sum(x, axis=spatial_axis) * inv_hw                # (B_tile, C)
    h = jnp.dot(feat, w1_ref[...].astype(jnp.float32),
                preferred_element_type=jnp.float32) + b1_ref[...].astype(jnp.float32)
    h = jnp.maximum(h, 0.0)                                      # ReLU
    y = jnp.dot(h, w2_ref[...].astype(jnp.float32),
                preferred_element_type=jnp.float32) + b2_ref[...].astype(jnp.float32)
    o_ref[...] = y.astype(o_ref.dtype)


# ---------------------------------------------------------------------------
# VMEM accounting helpers (padded footprints, per the perf review)
# ---------------------------------------------------------------------------
def _round_up(v, m):
    return ((v + m - 1) // m) * m


def _vmem_capacity_bytes():
    """Per-core VMEM capacity; conservative v7x-sized fallback if query fails."""
    try:
        return int(pltpu.get_tpu_info().vmem_capacity_bytes)
    except Exception:
        return 64 * 1024 * 1024


def _sublane_mult(itemsize):
    # Sub-32-bit dtypes pack along sublanes: f32 tiles are (8,128), bf16 (16,128).
    return 8 * max(1, 4 // itemsize)


def _tile_bytes(rows, cols, itemsize):
    """Padded VMEM bytes of a (rows, cols) block (lane dim padded to 128)."""
    return _round_up(rows, _sublane_mult(itemsize)) * _round_up(cols, 128) * itemsize


def _x_row_vmem_bytes(C, HW, itemsize, channels_last):
    """Padded VMEM bytes of ONE batch row of the x block (DMA destination)."""
    if channels_last:
        return _tile_bytes(HW, C, itemsize)
    return _tile_bytes(C, HW, itemsize)


def _weights_vmem_bytes(C, hidden, n_pad, itemsize):
    return (_tile_bytes(C, hidden, itemsize) + _tile_bytes(1, hidden, itemsize)
            + _tile_bytes(hidden, n_pad, itemsize) + _tile_bytes(1, n_pad, itemsize))


def _pick_batch_tile(B, x_row_bytes, out_row_bytes, resident_bytes, budget_bytes):
    """Largest batch tile whose padded pipeline footprint
       (2x double-buffered x block + 2x output block + resident weights)
       fits the budget; multiple of 8 (output sublane dim) unless it covers B.
    """
    per_b = 2 * x_row_bytes + 2 * out_row_bytes
    avail = max(per_b, budget_bytes - resident_bytes)
    bt = max(1, int(avail // per_b))
    if bt >= B:
        if B > 8:
            # Keep >= 2 grid steps so v7x's two TensorCores both get batch work
            # (dimension_semantics=("parallel",) does nothing with a 1-step grid).
            return _round_up(-(-B // 2), 8)
        return B
    # Multiple of 8 for the (b_tile, N_PAD) output block's sublane dim. May
    # overshoot the nominal budget for huge C*HW; vmem_limit_bytes is sized
    # from the actual footprint below.
    bt = max(8, (bt // 8) * 8)
    # Prefer a tile that divides B (avoids a ragged, partially-masked final
    # step), but don't shrink below ~half the budget-optimal tile.
    for cand in range(bt, max(7, bt // 2 - 1), -8):
        if B % cand == 0:
            return cand
    return bt


# ---------------------------------------------------------------------------
# Wrapper
# ---------------------------------------------------------------------------
def transfer_head_forward(x_feat, w1, b1, w2, b2, *, channels_last=False):
    """Fused GAP(1,1) -> flatten -> Linear(C,128) -> ReLU -> Linear(128,classes).

    x_feat : (B, C, H, W) backbone feature map if channels_last=False, or
             (B, H, W, C) if the backbone emits NHWC (TPU-conv-native). The
             NHWC path puts C on lanes (128-multiple for ResNets): ~2.6x less
             padded VMEM per tile and >=2 KiB contiguous DMA rows.
    Returns (B, num_classes) float32 logits.
    """
    if channels_last:
        B, H, W, C = x_feat.shape
        x = x_feat.reshape(B, H * W, C)        # free reshape, no transpose
    else:
        B, C, H, W = x_feat.shape
        x = x_feat.reshape(B, C, H * W)        # free reshape, no transpose
    HW = H * W
    hidden = w1.shape[1]
    num_classes = w2.shape[1]

    # Lane-dense output: pad classes to a 128-lane multiple (unmasked vst);
    # the wrapper slices the real classes back out.
    n_pad = max(128, _round_up(num_classes, 128))
    w2p = jnp.zeros((hidden, n_pad), w2.dtype).at[:, :num_classes].set(w2)
    b2p = jnp.zeros((1, n_pad), b2.dtype).at[:, :num_classes].set(b2)
    b1r = b1.reshape(1, hidden)

    cap = _vmem_capacity_bytes()               # 64 MiB v7x, 128 MiB v5e/v6e
    budget = int(cap * 0.70)                   # ~45 MiB v7x, ~90 MiB v5e/v6e
    x_row = _x_row_vmem_bytes(C, HW, x.dtype.itemsize, channels_last)
    out_row = n_pad * 4                        # f32 output bytes per batch row
    w_bytes = _weights_vmem_bytes(C, hidden, n_pad, w1.dtype.itemsize)

    def run(single_buffer_weights):
        w_bufs = 1 if single_buffer_weights else 2
        b_tile = _pick_batch_tile(B, x_row, out_row, w_bufs * w_bytes, budget)
        grid = (pl.cdiv(B, b_tile),)

        footprint = (2 * b_tile * x_row
                     + 2 * _round_up(b_tile, 8) * n_pad * 4
                     + w_bufs * w_bytes)
        # Explicit scoped-VMEM limit (defaults: 16 MiB v5e / 32 MiB v6e,v7x are
        # well below physical); sized from actual use + headroom, capped at cap.
        vmem_limit = int(min(cap, max(footprint + (8 << 20), 32 << 20)))

        if channels_last:
            x_spec = pl.BlockSpec((b_tile, HW, C), lambda i: (i, 0, 0))
        else:
            x_spec = pl.BlockSpec((b_tile, C, HW), lambda i: (i, 0, 0))

        def w_spec(shape):
            imap = lambda i: (0,) * len(shape)
            if single_buffer_weights:
                # Constant index_map across the grid -> one resident buffer is
                # enough; reclaims a second copy of w1/w2 worth of VMEM.
                return pl.BlockSpec(shape, imap, pipeline_mode=pl.Buffered(1))
            return pl.BlockSpec(shape, imap)

        kernel = functools.partial(head_kernel, inv_hw=1.0 / HW,
                                   channels_last=channels_last)
        cost = pl.CostEstimate(
            flops=B * C * HW + 2 * B * C * hidden + 2 * B * hidden * n_pad,
            transcendentals=0,
            bytes_accessed=(x.size * x.dtype.itemsize
                            + (w1.size + b1r.size + w2p.size + b2p.size)
                            * w1.dtype.itemsize
                            + B * n_pad * 4),
        )

        return pl.pallas_call(
            kernel,
            out_shape=jax.ShapeDtypeStruct((B, n_pad), jnp.float32),
            grid=grid,
            in_specs=[x_spec,
                      w_spec((C, hidden)),
                      w_spec((1, hidden)),
                      w_spec((hidden, n_pad)),
                      w_spec((1, n_pad))],
            out_specs=pl.BlockSpec((b_tile, n_pad), lambda i: (i, 0)),
            compiler_params=pltpu.CompilerParams(
                dimension_semantics=("parallel",),
                vmem_limit_bytes=vmem_limit),
            cost_estimate=cost,
        )(x, w1, b1r, w2p, b2p)

    try:
        out = run(single_buffer_weights=True)
    except Exception:
        # pipeline_mode=pl.Buffered(1) not available on this jax version:
        # fall back to default double-buffered weight blocks.
        out = run(single_buffer_weights=False)

    return out[:, :num_classes]


# ---------------------------------------------------------------------------
# Self-test
# ---------------------------------------------------------------------------
if __name__ == "__main__":
    # Small synthetic shapes consistent with the module's replaced 'fc' head:
    # in_features (stand-in for resnet fc.in_features) = 64, hidden = 128,
    # num_classes = 10, 8x8 final feature map.
    B, C, H, W = 2, 64, 8, 8
    HIDDEN, NUM_CLASSES = 128, 10

    key = jax.random.PRNGKey(0)
    kx, kw1, kb1, kw2, kb2 = jax.random.split(key, 5)

    x = jax.random.normal(kx, (B, C, H, W), dtype=jnp.float32)
    # Deterministic synthetic parameters (no checkpoint load).
    w1 = jax.random.normal(kw1, (C, HIDDEN), dtype=jnp.float32) * 0.05
    b1 = jax.random.normal(kb1, (HIDDEN,), dtype=jnp.float32) * 0.01
    w2 = jax.random.normal(kw2, (HIDDEN, NUM_CLASSES), dtype=jnp.float32) * 0.05
    b2 = jax.random.normal(kb2, (NUM_CLASSES,), dtype=jnp.float32) * 0.01

    # Pure-JAX reference.
    feat_ref = jnp.mean(x, axis=(2, 3))
    y_ref = jnp.maximum(feat_ref @ w1 + b1, 0.0) @ w2 + b2

    # 1) NCHW feature-map layout (torch-native, channel-major).
    y = transfer_head_forward(x, w1, b1, w2, b2, channels_last=False)
    jax.block_until_ready(y)
    assert y.shape == (B, NUM_CLASSES)
    assert jnp.allclose(y, y_ref, atol=2e-3, rtol=2e-3)

    # 2) NHWC feature-map layout (TPU-conv-native; lane-dense C path).
    x_nhwc = jnp.transpose(x, (0, 2, 3, 1))
    y2 = transfer_head_forward(x_nhwc, w1, b1, w2, b2, channels_last=True)
    jax.block_until_ready(y2)
    assert jnp.allclose(y2, y_ref, atol=2e-3, rtol=2e-3)

    # 3) bf16 feature map (halves the dominant HBM read; kernel casts to f32).
    x_bf16 = x.astype(jnp.bfloat16)
    y3 = transfer_head_forward(x_bf16, w1, b1, w2, b2, channels_last=False)
    jax.block_until_ready(y3)
    y3_ref = (jnp.maximum(jnp.mean(x_bf16.astype(jnp.float32), axis=(2, 3))
                          @ w1 + b1, 0.0) @ w2 + b2)
    assert jnp.allclose(y3, y3_ref, atol=2e-3, rtol=2e-3)

    # 4) Batch-tiled path: >=2 grid steps (v7x 2-TC split) + ragged final block.
    B2 = 24
    xb = jax.random.normal(kx, (B2, C, H, W), dtype=jnp.float32)
    yb = transfer_head_forward(xb, w1, b1, w2, b2, channels_last=False)
    jax.block_until_ready(yb)
    yb_ref = (jnp.maximum(jnp.mean(xb, axis=(2, 3)) @ w1 + b1, 0.0) @ w2 + b2)
    assert yb.shape == (B2, NUM_CLASSES)
    assert jnp.allclose(yb, yb_ref, atol=2e-3, rtol=2e-3)

    print("KERNEL_OK")
</pallas_src>

<mosaic_0001>
module attributes {stable_mosaic.version = 11 : i64} {
  func.func @head_kernel(%arg0: i32, %arg1: memref<2x64x64xf32, #tpu.memory_space<vmem>>, %arg2: memref<64x128xf32, #tpu.memory_space<vmem>>, %arg3: memref<1x128xf32, #tpu.memory_space<vmem>>, %arg4: memref<128x128xf32, #tpu.memory_space<vmem>>, %arg5: memref<1x128xf32, #tpu.memory_space<vmem>>, %arg6: memref<2x128xf32, #tpu.memory_space<vmem>>) attributes {dimension_semantics = [#tpu.dimension_semantics<parallel>], iteration_bounds = array<i64: 1>, scalar_prefetch = 0 : i64, scratch_operands = 0 : i64, tpu.core_type = #tpu.core_type<tc>, window_params = [{transform_indices = @transform_0, window_bounds = array<i64: 2, 64, 64>}, {pipeline_mode = #tpu.pipeline_mode<synchronous>, transform_indices = @transform_1, window_bounds = array<i64: 64, 128>}, {pipeline_mode = #tpu.pipeline_mode<synchronous>, transform_indices = @transform_2, window_bounds = array<i64: 1, 128>}, {pipeline_mode = #tpu.pipeline_mode<synchronous>, transform_indices = @transform_3, window_bounds = array<i64: 128, 128>}, {pipeline_mode = #tpu.pipeline_mode<synchronous>, transform_indices = @transform_4, window_bounds = array<i64: 1, 128>}, {transform_indices = @transform_5, window_bounds = array<i64: 2, 128>}]} {
    %c0 = arith.constant 0 : index
    %c0_0 = arith.constant 0 : index
    %c0_1 = arith.constant 0 : index
    %0 = vector.load %arg1[%c0, %c0_0, %c0_1] : memref<2x64x64xf32, #tpu.memory_space<vmem>>, vector<2x64x64xf32>
    %cst = arith.constant dense<0.000000e+00> : vector<2x64xf32>
    %1 = vector.multi_reduction <add>, %0, %cst [2] : vector<2x64x64xf32> to vector<2x64xf32>
    %cst_2 = arith.constant 1.562500e-02 : f32
    %2 = vector.broadcast %cst_2 : f32 to vector<2x64xf32>
    %3 = arith.mulf %1, %2 : vector<2x64xf32>
    %c0_3 = arith.constant 0 : index
    %c0_4 = arith.constant 0 : index
    %4 = vector.load %arg2[%c0_3, %c0_4] : memref<64x128xf32, #tpu.memory_space<vmem>>, vector<64x128xf32>
    %cst_5 = arith.constant dense<0.000000e+00> : vector<2x128xf32>
    %5 = tpu.matmul %3, %4, %cst_5 {dimension_numbers = #tpu.dot_dimension_numbers<[1], [0], [0], [1], [0, 0, 1, 1], [], []>} : vector<2x64xf32>, vector<64x128xf32>, vector<2x128xf32> -> vector<2x128xf32>
    %c0_6 = arith.constant 0 : index
    %c0_7 = arith.constant 0 : index
    %6 = vector.load %arg3[%c0_6, %c0_7] : memref<1x128xf32, #tpu.memory_space<vmem>>, vector<1x128xf32>
    %7 = vector.broadcast %6 : vector<1x128xf32> to vector<2x128xf32>
    %8 = arith.addf %5, %7 : vector<2x128xf32>
    %cst_8 = arith.constant 0.000000e+00 : f32
    %9 = vector.broadcast %cst_8 : f32 to vector<2x128xf32>
    %10 = arith.maximumf %8, %9 : vector<2x128xf32>
    %c0_9 = arith.constant 0 : index
    %c0_10 = arith.constant 0 : index
    %11 = vector.load %arg4[%c0_9, %c0_10] : memref<128x128xf32, #tpu.memory_space<vmem>>, vector<128x128xf32>
    %cst_11 = arith.constant dense<0.000000e+00> : vector<2x128xf32>
    %12 = tpu.matmul %10, %11, %cst_11 {dimension_numbers = #tpu.dot_dimension_numbers<[1], [0], [0], [1], [0, 0, 1, 1], [], []>} : vector<2x128xf32>, vector<128x128xf32>, vector<2x128xf32> -> vector<2x128xf32>
    %c0_12 = arith.constant 0 : index
    %c0_13 = arith.constant 0 : index
    %13 = vector.load %arg5[%c0_12, %c0_13] : memref<1x128xf32, #tpu.memory_space<vmem>>, vector<1x128xf32>
    %14 = vector.broadcast %13 : vector<1x128xf32> to vector<2x128xf32>
    %15 = arith.addf %12, %14 : vector<2x128xf32>
    %c0_14 = arith.constant 0 : index
    %c0_15 = arith.constant 0 : index
    %16 = vector.load %arg6[%c0_14, %c0_15] : memref<2x128xf32, #tpu.memory_space<vmem>>, vector<2x128xf32>
    tpu.vector_store %arg6[%c0_14, %c0_15], %15 {strides = array<i32>} : memref<2x128xf32, #tpu.memory_space<vmem>>, vector<2x128xf32>,
    return
  }
  func.func @transform_0(%arg0: i32) -> (i32, i32, i32) {
    %c0_i32 = arith.constant 0 : i32
    %c0_i32_0 = arith.constant 0 : i32
    %c0_i32_1 = arith.constant 0 : i32
    return %arg0, %c0_i32, %c0_i32_0 : i32, i32, i32
  }
  func.func @transform_1(%arg0: i32) -> (i32, i32) {
    %c0_i32 = arith.constant 0 : i32
    %c0_i32_0 = arith.constant 0 : i32
    %c0_i32_1 = arith.constant 0 : i32
    return %c0_i32, %c0_i32_0 : i32, i32
  }
  func.func @transform_2(%arg0: i32) -> (i32, i32) {
    %c0_i32 = arith.constant 0 : i32
    %c0_i32_0 = arith.constant 0 : i32
    %c0_i32_1 = arith.constant 0 : i32
    return %c0_i32, %c0_i32_0 : i32, i32
  }
  func.func @transform_3(%arg0: i32) -> (i32, i32) {
    %c0_i32 = arith.constant 0 : i32
    %c0_i32_0 = arith.constant 0 : i32
    %c0_i32_1 = arith.constant 0 : i32
    return %c0_i32, %c0_i32_0 : i32, i32
  }
  func.func @transform_4(%arg0: i32) -> (i32, i32) {
    %c0_i32 = arith.constant 0 : i32
    %c0_i32_0 = arith.constant 0 : i32
    %c0_i32_1 = arith.constant 0 : i32
    return %c0_i32, %c0_i32_0 : i32, i32
  }
  func.func @transform_5(%arg0: i32) -> (i32, i32) {
    %c0_i32 = arith.constant 0 : i32
    %c0_i32_0 = arith.constant 0 : i32
    return %arg0, %c0_i32 : i32, i32
  }
}

module attributes {stable_mosaic.version = 11 : i64} {
  func.func @head_kernel(%arg0: i32, %arg1: memref<2x64x64xf32, #tpu.memory_space<vmem>>, %arg2: memref<64x128xf32, #tpu.memory_space<vmem>>, %arg3: memref<1x128xf32, #tpu.memory_space<vmem>>, %arg4: memref<128x128xf32, #tpu.memory_space<vmem>>, %arg5: memref<1x128xf32, #tpu.memory_space<vmem>>, %arg6: memref<2x128xf32, #tpu.memory_space<vmem>>) attributes {dimension_semantics = [#tpu.dimension_semantics<parallel>], iteration_bounds = array<i64: 1>, scalar_prefetch = 0 : i64, scratch_operands = 0 : i64, tpu.core_type = #tpu.core_type<tc>, window_params = [{transform_indices = @transform_0, window_bounds = array<i64: 2, 64, 64>}, {pipeline_mode = #tpu.pipeline_mode<synchronous>, transform_indices = @transform_1, window_bounds = array<i64: 64, 128>}, {pipeline_mode = #tpu.pipeline_mode<synchronous>, transform_indices = @transform_2, window_bounds = array<i64: 1, 128>}, {pipeline_mode = #tpu.pipeline_mode<synchronous>, transform_indices = @transform_3, window_bounds = array<i64: 128, 128>}, {pipeline_mode = #tpu.pipeline_mode<synchronous>, transform_indices = @transform_4, window_bounds = array<i64: 1, 128>}, {transform_indices = @transform_5, window_bounds = array<i64: 2, 128>}]} {
    %c0 = arith.constant 0 : index
    %c0_0 = arith.constant 0 : index
    %c0_1 = arith.constant 0 : index
    %0 = vector.load %arg1[%c0, %c0_0, %c0_1] : memref<2x64x64xf32, #tpu.memory_space<vmem>>, vector<2x64x64xf32>
    %cst = arith.constant dense<0.000000e+00> : vector<2x64xf32>
    %1 = vector.multi_reduction <add>, %0, %cst [2] : vector<2x64x64xf32> to vector<2x64xf32>
    %cst_2 = arith.constant 1.562500e-02 : f32
    %2 = vector.broadcast %cst_2 : f32 to vector<2x64xf32>
    %3 = arith.mulf %1, %2 : vector<2x64xf32>
    %c0_3 = arith.constant 0 : index
    %c0_4 = arith.constant 0 : index
    %4 = vector.load %arg2[%c0_3, %c0_4] : memref<64x128xf32, #tpu.memory_space<vmem>>, vector<64x128xf32>
    %cst_5 = arith.constant dense<0.000000e+00> : vector<2x128xf32>
    %5 = tpu.matmul %3, %4, %cst_5 {dimension_numbers = #tpu.dot_dimension_numbers<[1], [0], [0], [1], [0, 0, 1, 1], [], []>} : vector<2x64xf32>, vector<64x128xf32>, vector<2x128xf32> -> vector<2x128xf32>
    %c0_6 = arith.constant 0 : index
    %c0_7 = arith.constant 0 : index
    %6 = vector.load %arg3[%c0_6, %c0_7] : memref<1x128xf32, #tpu.memory_space<vmem>>, vector<1x128xf32>
    %7 = vector.broadcast %6 : vector<1x128xf32> to vector<2x128xf32>
    %8 = arith.addf %5, %7 : vector<2x128xf32>
    %cst_8 = arith.constant 0.000000e+00 : f32
    %9 = vector.broadcast %cst_8 : f32 to vector<2x128xf32>
    %10 = arith.maximumf %8, %9 : vector<2x128xf32>
    %c0_9 = arith.constant 0 : index
    %c0_10 = arith.constant 0 : index
    %11 = vector.load %arg4[%c0_9, %c0_10] : memref<128x128xf32, #tpu.memory_space<vmem>>, vector<128x128xf32>
    %cst_11 = arith.constant dense<0.000000e+00> : vector<2x128xf32>
    %12 = tpu.matmul %10, %11, %cst_11 {dimension_numbers = #tpu.dot_dimension_numbers<[1], [0], [0], [1], [0, 0, 1, 1], [], []>} : vector<2x128xf32>, vector<128x128xf32>, vector<2x128xf32> -> vector<2x128xf32>
    %c0_12 = arith.constant 0 : index
    %c0_13 = arith.constant 0 : index
    %13 = vector.load %arg5[%c0_12, %c0_13] : memref<1x128xf32, #tpu.memory_space<vmem>>, vector<1x128xf32>
    %14 = vector.broadcast %13 : vector<1x128xf32> to vector<2x128xf32>
    %15 = arith.addf %12, %14 : vector<2x128xf32>
    %c0_14 = arith.constant 0 : index
    %c0_15 = arith.constant 0 : index
    %16 = vector.load %arg6[%c0_14, %c0_15] : memref<2x128xf32, #tpu.memory_space<vmem>>, vector<2x128xf32>
    tpu.vector_store %arg6[%c0_14, %c0_15], %15 {strides = array<i32>} : memref<2x128xf32, #tpu.memory_space<vmem>>, vector<2x128xf32>,
    return
  }
  func.func @transform_0(%arg0: i32) -> (i32, i32, i32) {
    %c0_i32 = arith.constant 0 : i32
    %c0_i32_0 = arith.constant 0 : i32
    %c0_i32_1 = arith.constant 0 : i32
    return %arg0, %c0_i32, %c0_i32_0 : i32, i32, i32
  }
  func.func @transform_1(%arg0: i32) -> (i32, i32) {
    %c0_i32 = arith.constant 0 : i32
    %c0_i32_0 = arith.constant 0 : i32
    %c0_i32_1 = arith.constant 0 : i32
    return %c0_i32, %c0_i32_0 : i32, i32
  }
  func.func @transform_2(%arg0: i32) -> (i32, i32) {
    %c0_i32 = arith.constant 0 : i32
    %c0_i32_0 = arith.constant 0 : i32
    %c0_i32_1 = arith.constant 0 : i32
    return %c0_i32, %c0_i32_0 : i32, i32
  }
  func.func @transform_3(%arg0: i32) -> (i32, i32) {
    %c0_i32 = arith.constant 0 : i32
    %c0_i32_0 = arith.constant 0 : i32
    %c0_i32_1 = arith.constant 0 : i32
    return %c0_i32, %c0_i32_0 : i32, i32
  }
  func.func @transform_4(%arg0: i32) -> (i32, i32) {
    %c0_i32 = arith.constant 0 : i32
    %c0_i32_0 = arith.constant 0 : i32
    %c0_i32_1 = arith.constant 0 : i32
    return %c0_i32, %c0_i32_0 : i32, i32
  }
  func.func @transform_5(%arg0: i32) -> (i32, i32) {
    %c0_i32 = arith.constant 0 : i32
    %c0_i32_0 = arith.constant 0 : i32
    return %arg0, %c0_i32 : i32, i32
  }
}

</mosaic_0001>

<bundles_post_ra>
// kernel: tpu_custom_call.1
= control target key start
LH: loop header
LB: loop body
LE: loop exit
PB: predicated region body
PF: predicated region fallthrough
CT: control target
= control target key end

     0   :  { %10 = vsyncpa [#allocation3], 0  ;;  %s741_s0 = inlined_call_operand.hbm [shape: f32[2,64,64], index: 0, kind: input, shape index: {}]   ;;  %s742_s1 = inlined_call_operand.hbm [shape: f32[64,128], index: 1, kind: input, shape index: {}]   ;;  %s743_s2 = inlined_call_operand.vmem [shape: f32[1,128], index: 2, kind: input, shape index: {}]   ;;  %s744_s3 = inlined_call_operand.hbm [shape: f32[128,128], index: 3, kind: input, shape index: {}]   ;;  %s745_s4 = inlined_call_operand.vmem [shape: f32[1,128], index: 4, kind: input, shape index: {}]   ;;  %s746_s5 = inlined_call_operand.hbm [shape: f32[2,128], index: 5, kind: output, shape index: {}]  }
   0x1   :  { %11 = vsyncpa [#allocation6], 0 }
   0x2   :  { %12 = vsyncpa [#allocation4], 0  ;;  %s630_s18 = smov [#allocation5]   ;;  %s631_s20 = smov [#allocation2]  }
   0x3   :  { %s30_s19 = sshll.u32 %s630_s18, 4  ;;  %s18_s21 = sshll.u32 %s631_s20, 4  ;;  %s31_s19 = int_to_ptr.vmem [resolvable:$true] %s30_s19  ;;  %s19_s21 = int_to_ptr.vmem [resolvable:$true] %s18_s21 }
   0x4   :  { %s552_s22 = scalar_lea.vmem %s31_s19, 1024  ;;  %p557_p1 = scmp.lt.s32.totalorder %s31_s19, %s31_s19 }
   0x5   :  { %p553_p0 = scmp.ne.s32.totalorder %s31_s19, %s552_s22  ;;  %p558_p2 = scmp.lt.s32.totalorder %s552_s22, %s552_s22 }
   0x7   :  { %p559_p3 = por %p558_p2, %p557_p1 }
   0x9   :  { %p560_p4 = pnand %p559_p3, %p553_p0 }
   0xb   :  { %563 = shalt.err (!%p560_p4)
}
   0xc   :  { %s632_s23 = smov 128   ;;  %s633_s24 = smov 8  }
   0xd   :  { %36 = dma.hbm_to_vmem [thread:$0]  %s742_s1, 1024, %s31_s19, [#allocation6], %s632_s23, %s632_s23, %s633_s24  }
   0xe   :  { %s572_s27 = scalar_lea.vmem %s19_s21, 2048  ;;  %p577_p6 = scmp.lt.s32.totalorder %s19_s21, %s19_s21 }
   0xf   :  { %p573_p5 = scmp.ne.s32.totalorder %s19_s21, %s572_s27  ;;  %p578_p7 = scmp.lt.s32.totalorder %s572_s27, %s572_s27 }
  0x11   :  { %p579_p8 = por %p578_p7, %p577_p6 }
  0x13   :  { %p580_p9 = pnand %p579_p8, %p573_p5 }
  0x15   :  { %583 = shalt.err (!%p580_p9)
}
  0x16   :  { %24 = dma.hbm_to_vmem [thread:$0]  %s741_s0, 2048, %s19_s21, [#allocation3], %s632_s23, %s632_s23, %s633_s24  }
  0x17   :  { %s634_s30 = smov [#allocation7]  }
  0x18   :  { %s44_s6 = sshll.u32 %s634_s30, 4  ;;  %s45_s6 = int_to_ptr.vmem [resolvable:$true] %s44_s6 }
  0x19   :  { %s592_s7 = scalar_lea.vmem %s45_s6, 2048  ;;  %p597_p11 = scmp.lt.s32.totalorder %s45_s6, %s45_s6 }
  0x1a   :  { %p593_p10 = scmp.ne.s32.totalorder %s45_s6, %s592_s7  ;;  %p598_p12 = scmp.lt.s32.totalorder %s592_s7, %s592_s7 }
  0x1c   :  { %p599_p13 = por %p598_p12, %p597_p11 }
  0x1e   :  { %p600_p0 = pnand %p599_p13, %p593_p10 }
  0x20   :  { %603 = shalt.err (!%p600_p0)
}
  0x21   :  { %50 = dma.hbm_to_vmem [thread:$0]  %s744_s3, 2048, %s45_s6, [#allocation6], %s632_s23, %s632_s23, %s633_s24  }
  0x22   :  { %624 = dma.done.wait [#allocation3], 2048  }
  0x23   :  { %625 = vsyncadd [#allocation3], 4294965248 }
  0x24   :  { %626 = dma.done.wait [#allocation6], 3072  }
  0x25   :  { %627 = vsyncadd [#allocation6], 4294964224  ;;  %vm78_vm0 = vcmask 523264   ;;  %v70_v0 = vld [vmem:[#allocation2 + $0x40] sm:$0xff]  ;;  %v71_v2 = vld [vmem:[#allocation2 + $0x48] sm:$0xff]  ;;  %v635_v33 = vmov 0.0   ;;  %v174_v58 = vlaneseq }
  0x26   :  { %v62_v1 = vld [vmem:[#allocation2] sm:$0xff]  ;;  %v103_v3 = vsel %vm78_vm0, %v70_v0, 0.0  ;;  %v63_v5 = vld [vmem:[#allocation2 + $0x8] sm:$0xff]  ;;  %v106_v6 = vsel %vm78_vm0, %v71_v2, 0.0  ;;  %v72_v8 = vld [vmem:[#allocation2 + $0x50] sm:$0xff]  ;;  %482 = vmatprep.subr.mxu0 %v635_v33  ;;  %501 = vmatprep.subr.mxu1 %v635_v33  ;;  %vm636_vm1 = vmmov 0  }
  0x27   :  { %v79_v4 = vsel %vm78_vm0, %v62_v1, 0.0  ;;  %104 = vadd.xlane.f32.xlu1 %v103_v3  ;;  %v82_v7 = vsel %vm78_vm0, %v63_v5, 0.0  ;;  %v64_v9 = vld [vmem:[#allocation2 + $0x10] sm:$0xff]  ;;  %v109_v10 = vsel %vm78_vm0, %v72_v8, 0.0  ;;  %v73_v12 = vld [vmem:[#allocation2 + $0x58] sm:$0xff]  ;;  %v74_v16 = vld [vmem:[#allocation2 + $0x60] sm:$0xff]  ;;  %498 = vmatprep.mubr.msk.f32.mxu0 %vm636_vm1, %v635_v33 }
  0x28   :  { %80 = vadd.xlane.f32.xlu0 %v79_v4  ;;  %v85_v11 = vsel %vm78_vm0, %v64_v9, 0.0  ;;  %v65_v13 = vld [vmem:[#allocation2 + $0x18] sm:$0xff]  ;;  %v112_v14 = vsel %vm78_vm0, %v73_v12, 0.0  ;;  %v66_v17 = vld [vmem:[#allocation2 + $0x20] sm:$0xff]  ;;  %v115_v18 = vsel %vm78_vm0, %v74_v16, 0.0  ;;  %v75_v20 = vld [vmem:[#allocation2 + $0x68] sm:$0xff]  ;;  %533 = vmatprep.mubr.msk.f32.mxu1 %vm636_vm1, %v635_v33 }
  0x29   :  { %v88_v15 = vsel %vm78_vm0, %v65_v13, 0.0  ;;  %v91_v19 = vsel %vm78_vm0, %v66_v17, 0.0  ;;  %v67_v21 = vld [vmem:[#allocation2 + $0x28] sm:$0xff]  ;;  %v118_v22 = vsel %vm78_vm0, %v75_v20, 0.0  ;;  %v76_v24 = vld [vmem:[#allocation2 + $0x70] sm:$0xff]  ;;  %v77_v28 = vld [vmem:[#allocation2 + $0x78] sm:$0xff] }
  0x2a   :  { %v94_v23 = vsel %vm78_vm0, %v67_v21, 0.0  ;;  %v68_v25 = vld [vmem:[#allocation2 + $0x30] sm:$0xff]  ;;  %v121_v26 = vsel %vm78_vm0, %v76_v24, 0.0  ;;  %v69_v29 = vld [vmem:[#allocation2 + $0x38] sm:$0xff]  ;;  %v124_v30 = vsel %vm78_vm0, %v77_v28, 0.0  ;;  %v148_v35 = vld [vmem:[#allocation5 + $0x28] sm:$0xff] }
  0x2b   :  { %107 = vadd.xlane.f32.xlu1 %v106_v6  ;;  %v97_v27 = vsel %vm78_vm0, %v68_v25, 0.0  ;;  %v100_v31 = vsel %vm78_vm0, %v69_v29, 0.0  ;;  %v150_v32 = vld [vmem:[#allocation5 + $0x38] sm:$0xff]  ;;  %v149_v34 = vld [vmem:[#allocation5 + $0x30] sm:$0xff]  ;;  %v147_v36 = vld [vmem:[#allocation5 + $0x20] sm:$0xff]  ;;  %v175_v61 = vand.u32 127, %v174_v58 }
  0x2c   :  { %83 = vadd.xlane.f32.xlu0 %v82_v7  ;;  %483 = vmatpush3.msra.mxu0 %v150_v32  ;;  %v146_v37 = vld [vmem:[#allocation5 + $0x18] sm:$0xff]  ;;  %v145_v38 = vld [vmem:[#allocation5 + $0x10] sm:$0xff]  ;;  %v144_v39 = vld [vmem:[#allocation5 + $0x8] sm:$0xff]  ;;  %v177_v62 = vshrl.u32 %v174_v58, 7  ;;  %vm185_vm2 = vcmask 130112   ;;  %vm192_vm3 = vcmask 195712  }
  0x2d   :  { %484 = vmatprep.subr.mxu0 %v635_v33  ;;  %v143_v40 = vld [vmem:[#allocation5] sm:$0xff]  ;;  %v358_v41 = vld [vmem:[#allocation7 + $0x78] sm:$0xff]  ;;  %v357_v42 = vld [vmem:[#allocation7 + $0x70] sm:$0xff]  ;;  %v180_v1 = vadd.s32 4294967288, %v175_v61  ;;  %v187_v2 = vadd.s32 4294967280, %v175_v61  ;;  %v194_v3 = vadd.s32 4294967272, %v175_v61 }
  0x2e   :  { %485 = vmatpush3.msra.mxu0 %v149_v34  ;;  %502 = vmatpush3.msra.mxu1 %v358_v41  ;;  %v356_v43 = vld [vmem:[#allocation7 + $0x68] sm:$0xff]  ;;  %v355_v44 = vld [vmem:[#allocation7 + $0x60] sm:$0xff]  ;;  %v354_v45 = vld [vmem:[#allocation7 + $0x58] sm:$0xff]  ;;  %v201_v4 = vadd.s32 4294967264, %v175_v61  ;;  %v178_v5 = vsub.s32 %v175_v61, %v177_v62  ;;  %vm199_vm4 = vcmask 261312   ;;  %v215_v12 = vadd.s32 4294967248, %v175_v61 }
  0x2f   :  { %110 = vadd.xlane.f32.xlu1 %v109_v10  ;;  %486 = vmatprep.subr.mxu0 %v635_v33  ;;  %v353_v46 = vld [vmem:[#allocation7 + $0x50] sm:$0xff]  ;;  %v352_v47 = vld [vmem:[#allocation7 + $0x48] sm:$0xff]  ;;  %v351_v48 = vld [vmem:[#allocation7 + $0x40] sm:$0xff]  ;;  %v183_v8 = vsub.s32 %v180_v1, %v177_v62  ;;  %v190_v9 = vsub.s32 %v187_v2, %v177_v62  ;;  %v208_v10 = vadd.s32 4294967256, %v175_v61  ;;  %vm206_vm5 = vcmask 326912   ;;  %s637_s11 = smov [#allocation8]  }
  0x30   :  { %86 = vadd.xlane.f32.xlu0 %v85_v11  ;;  %487 = vmatpush3.msra.mxu0 %v148_v35  ;;  %v350_v49 = vld [vmem:[#allocation7 + $0x38] sm:$0xff]  ;;  %v349_v50 = vld [vmem:[#allocation7 + $0x30] sm:$0xff]  ;;  %v348_v51 = vld [vmem:[#allocation7 + $0x28] sm:$0xff]  ;;  %v197_v11 = vsub.s32 %v194_v3, %v177_v62  ;;  %vm213_vm6 = vcmask 392512   ;;  %v222_v28 = vadd.s32 4294967240, %v175_v61  ;;  %vm220_vm7 = vcmask 458112  }
  0x31   :  { %488 = vmatprep.subr.mxu0 %v635_v33  ;;  %503 = vmatprep.subr.mxu1 %v635_v33  ;;  %v347_v52 = vld [vmem:[#allocation7 + $0x20] sm:$0xff]  ;;  %v346_v53 = vld [vmem:[#allocation7 + $0x18] sm:$0xff]  ;;  %v211_v24 = vsub.s32 %v208_v10, %v177_v62  ;;  %vm227_vm8 = vcmask 523712   ;;  %vm268_vm9 = vcmask 1041409   ;;  %s443_s12 = sshll.u32 %s637_s11, 4  ;;  %s444_s12 = int_to_ptr.vmem [resolvable:$true] %s443_s12 }
  0x32   :  { %489 = vmatpush3.msra.mxu0 %v147_v36  ;;  %504 = vmatpush3.msra.mxu1 %v357_v42  ;;  %v343_v10 = vld [vmem:[#allocation7] sm:$0xff]  ;;  %s604_s13 = scalar_lea.vmem %s444_s12, 32  ;;  %p609_p2 = scmp.lt.s32.totalorder %s444_s12, %s444_s12 }
  0x33   :  { %113 = vadd.xlane.f32.xlu1 %v112_v14  ;;  %490 = vmatprep.subr.mxu0 %v635_v33  ;;  %p605_p1 = scmp.ne.s32.totalorder %s444_s12, %s604_s13  ;;  %p610_p3 = scmp.lt.s32.totalorder %s604_s13, %s604_s13 }
  0x34   :  { %89 = vadd.xlane.f32.xlu0 %v88_v15  ;;  %491 = vmatpush3.msra.mxu0 %v146_v37  ;;  %v204_v15 = vsub.s32 %v201_v4, %v177_v62 }
  0x35   :  { %492 = vmatprep.subr.mxu0 %v635_v33  ;;  %505 = vmatprep.subr.mxu1 %v635_v33  ;;  %p611_p4 = por %p610_p3, %p609_p2 }
  0x36   :  { %493 = vmatpush3.msra.mxu0 %v145_v38  ;;  %506 = vmatpush3.msra.mxu1 %v356_v43 }
  0x37   :  { %116 = vadd.xlane.f32.xlu1 %v115_v18  ;;  %494 = vmatprep.subr.mxu0 %v635_v33  ;;  %p612_p5 = pnand %p611_p4, %p605_p1 }
  0x38   :  { %92 = vadd.xlane.f32.xlu0 %v91_v19  ;;  %495 = vmatpush3.msra.mxu0 %v144_v39 }
  0x39   :  { %496 = vmatprep.subr.mxu0 %v635_v33  ;;  %507 = vmatprep.subr.mxu1 %v635_v33 }
  0x3a   :  { %497 = vmatpush3.msra.mxu0 %v143_v40  ;;  %508 = vmatpush3.msra.mxu1 %v355_v44 }
  0x3b   :  { %119 = vadd.xlane.f32.xlu1 %v118_v22  ;;  %509 = vmatprep.subr.mxu1 %v635_v33 }
  0x3c   :  { %95 = vadd.xlane.f32.xlu0 %v94_v23  ;;  %510 = vmatpush3.msra.mxu1 %v354_v45 }
  0x3d   :  { %511 = vmatprep.subr.mxu1 %v635_v33 }
  0x3e   :  { %512 = vmatpush3.msra.mxu1 %v353_v46  ;;  %v225_v46 = vsub.s32 %v222_v28, %v177_v62 }
  0x3f   :  { %122 = vadd.xlane.f32.xlu1 %v121_v26  ;;  %513 = vmatprep.subr.mxu1 %v635_v33 }
  0x40   :  { %98 = vadd.xlane.f32.xlu0 %v97_v27  ;;  %514 = vmatpush3.msra.mxu1 %v352_v47  ;;  %v218_v27 = vsub.s32 %v215_v12, %v177_v62 }
  0x41   :  { %515 = vmatprep.subr.mxu1 %v635_v33 }
  0x42   :  { %516 = vmatpush3.msra.mxu1 %v351_v48 }
  0x43   :  { %125 = vadd.xlane.f32.xlu1 %v124_v30  ;;  %517 = vmatprep.subr.mxu1 %v635_v33 }
  0x44   :  { %101 = vadd.xlane.f32.xlu0 %v100_v31  ;;  %518 = vmatpush3.msra.mxu1 %v350_v49 }
  0x45   :  { %519 = vmatprep.subr.mxu1 %v635_v33 }
  0x46   :  { %520 = vmatpush3.msra.mxu1 %v349_v50 }
  0x47   :  { %521 = vmatprep.subr.mxu1 %v635_v33 }
  0x48   :  { %522 = vmatpush3.msra.mxu1 %v348_v51 }
  0x49   :  { %523 = vmatprep.subr.mxu1 %v635_v33 }
  0x4a   :  { %524 = vmatpush3.msra.mxu1 %v347_v52 }
  0x4b   :  { %525 = vmatprep.subr.mxu1 %v635_v33 }
  0x4c   :  { %526 = vmatpush3.msra.mxu1 %v346_v53 }
  0x4d   :  { %527 = vmatprep.subr.mxu1 %v635_v33 }
  0xb0   :  { %v105_v54 = vpop.xlane.xlu1 %104 }
  0xb1   :  { %v81_v55 = vpop.xlane.xlu0 %80  ;;  %v135_v16 = vmul.f32 0.015625, %v105_v54 }
  0xb2   :  { %v127_v17 = vmul.f32 0.015625, %v81_v55 }
  0xb3   :  { %v232_v34 = vrot.slane %v135_v16, %v178_v5  ;;  %v455_v16 = vld [vmem:[%s745_s4] ss:$0 sm:$0xff] }
  0xb4   :  { %v108_v56 = vpop.xlane.xlu1 %107  ;;  %v179_v35 = vrot.slane %v127_v17, %v178_v5 }
  0xb5   :  { %v84_v57 = vpop.xlane.xlu0 %83  ;;  %v136_v13 = vmul.f32 0.015625, %v108_v56 }
  0xb6   :  { %v128_v14 = vmul.f32 0.015625, %v84_v57 }
  0xb7   :  { %v236_v29 = vrot.slane %v136_v13, %v183_v8 }
  0xb8   :  { %v111_v59 = vpop.xlane.xlu1 %110  ;;  %v184_v30 = vrot.slane %v128_v14, %v183_v8  ;;  %v345_v8 = vld [vmem:[#allocation7 + $0x10] sm:$0xff] }
  0xb9   :  { %v87_v60 = vpop.xlane.xlu0 %86  ;;  %v137_v18 = vmul.f32 0.015625, %v111_v59  ;;  %v237_v47 = vsel %vm185_vm2, %v236_v29, %v232_v34  ;;  %528 = vmatpush3.msra.mxu1 %v345_v8 }
  0xba   :  { %v129_v19 = vmul.f32 0.015625, %v87_v60  ;;  %v186_v48 = vsel %vm185_vm2, %v184_v30, %v179_v35  ;;  %529 = vmatprep.subr.mxu1 %v635_v33 }
  0xbb   :  { %v241_v36 = vrot.slane %v137_v18, %v190_v9 }
  0xbc   :  { %v114_v63 = vpop.xlane.xlu1 %113  ;;  %v191_v37 = vrot.slane %v129_v19, %v190_v9  ;;  %v344_v9 = vld [vmem:[#allocation7 + $0x8] sm:$0xff] }
  0xbd   :  { %v90_v0 = vpop.xlane.xlu0 %89  ;;  %v138_v22 = vmul.f32 0.015625, %v114_v63  ;;  %v242_v51 = vsel %vm192_vm3, %v241_v36, %v237_v47  ;;  %530 = vmatpush3.msra.mxu1 %v344_v9 }
  0xbe   :  { %v130_v23 = vmul.f32 0.015625, %v90_v0  ;;  %v193_v52 = vsel %vm192_vm3, %v191_v37, %v186_v48  ;;  %531 = vmatprep.subr.mxu1 %v635_v33 }
  0xbf   :  { %v246_v40 = vrot.slane %v138_v22, %v197_v11  ;;  %532 = vmatpush3.msra.mxu1 %v343_v10 }
  0xc0   :  { %v117_v6 = vpop.xlane.xlu1 %116  ;;  %v198_v41 = vrot.slane %v130_v23, %v197_v11  ;;  %v453_v11 = vld [vmem:[%s743_s2] ss:$0 sm:$0xff] }
  0xc1   :  { %v93_v7 = vpop.xlane.xlu0 %92  ;;  %v139_v25 = vmul.f32 0.015625, %v117_v6  ;;  %v247_v57 = vsel %vm199_vm4, %v246_v40, %v242_v51 }
  0xc2   :  { %v131_v26 = vmul.f32 0.015625, %v93_v7  ;;  %v200_v58 = vsel %vm199_vm4, %v198_v41, %v193_v52 }
  0xc3   :  { %v251_v44 = vrot.slane %v139_v25, %v204_v15 }
  0xc4   :  { %v120_v20 = vpop.xlane.xlu1 %119  ;;  %v205_v45 = vrot.slane %v131_v26, %v204_v15 }
  0xc5   :  { %v96_v21 = vpop.xlane.xlu0 %95  ;;  %v140_v31 = vmul.f32 0.015625, %v120_v20  ;;  %v252_v61 = vsel %vm206_vm5, %v251_v44, %v247_v57 }
  0xc6   :  { %v132_v32 = vmul.f32 0.015625, %v96_v21  ;;  %v207_v62 = vsel %vm206_vm5, %v205_v45, %v200_v58 }
  0xc7   :  { %v256_v49 = vrot.slane %v140_v31, %v211_v24 }
  0xc8   :  { %v123_v38 = vpop.xlane.xlu1 %122  ;;  %v212_v50 = vrot.slane %v132_v32, %v211_v24 }
  0xc9   :  { %v99_v39 = vpop.xlane.xlu0 %98  ;;  %v141_v42 = vmul.f32 0.015625, %v123_v38  ;;  %v257_v63 = vsel %vm213_vm6, %v256_v49, %v252_v61 }
  0xca   :  { %v133_v43 = vmul.f32 0.015625, %v99_v39  ;;  %v214_v0 = vsel %vm213_vm6, %v212_v50, %v207_v62 }
  0xcb   :  { %v261_v53 = vrot.slane %v141_v42, %v218_v27 }
  0xcc   :  { %v219_v54 = vrot.slane %v133_v43, %v218_v27  ;;  %v126_v55 = vpop.xlane.xlu1 %125 }
  0xcd   :  { %v102_v56 = vpop.xlane.xlu0 %101  ;;  %v142_v59 = vmul.f32 0.015625, %v126_v55  ;;  %v262_v3 = vsel %vm220_vm7, %v261_v53, %v257_v63 }
  0xce   :  { %v134_v60 = vmul.f32 0.015625, %v102_v56  ;;  %v221_v4 = vsel %vm220_vm7, %v219_v54, %v214_v0 }
  0xcf   :  { %v266_v1 = vrot.slane %v142_v59, %v225_v46 }
  0xd0   :  { %v226_v2 = vrot.slane %v134_v60, %v225_v46 }
  0xd1   :  { %v267_v6 = vsel %vm227_vm8, %v266_v1, %v262_v3 }
  0xd2   :  { %v228_v5 = vsel %vm227_vm8, %v226_v2, %v221_v4 }
  0xd3   :  { %v269_v7 = vsel %vm268_vm9, %v267_v6, %v228_v5 }
  0xd4   :  { %499 = vmatmul.mubr.msk.f32.vlgmr.msra.gmra.mxu0 %vm78_vm0, %v269_v7 }
 0x194   :  { %v338_v12 = vpop.f32.mrf.mxu0 }
 0x195   :  { %v339_v13 = vadd.f32 %v453_v11, %v338_v12 }
 0x196   :  { %v500_v14 = vpop.f32.mrf.mxu0 }
 0x197   :  { %v342_v15 = vmax.f32 %v339_v13, 0.0 }
 0x199   :  { %534 = vmatmul.mubr.f32.vlgmr.msra.gmra.mxu1 %v342_v15 }
 0x259   :  { %v432_v17 = vpop.f32.mrf.mxu1 }
 0x25a   :  { %v433_v18 = vadd.f32 %v455_v16, %v432_v17 }
 0x25b   :  { %v535_v33 = vpop.f32.mrf.mxu1 }
 0x25c   :  { %436 = vst [vmem:[#allocation8] sm:$0x3] %v433_v18 }
 0x25d   :  { %615 = shalt.err (!%p612_p5)
}
 0x25e   :  { %446 = dma.vmem_to_hbm [thread:$0]  %s444_s12, 32, %s746_s5, [#allocation4]  }
 0x25f   :  { %628 = dma.done.wait [#allocation4], 32  }
 0x260   :  { %629 = vsyncadd [#allocation4], 4294967264 }
 0x261   :  { %450 = vsyncpa [#allocation3], 1 }
 0x262   :  { %451 = vsyncpa [#allocation6], 1 }
 0x263   :  { %452 = vsyncpa [#allocation4], 1 }

// kernel: tpu_custom_call.1
= control target key start
LH: loop header
LB: loop body
LE: loop exit
PB: predicated region body
PF: predicated region fallthrough
CT: control target
= control target key end

     0   :  { %10 = vsyncpa [#allocation3], 0  ;;  %s741_s0 = inlined_call_operand.hbm [shape: f32[2,64,64], index: 0, kind: input, shape index: {}]   ;;  %s742_s1 = inlined_call_operand.hbm [shape: f32[64,128], index: 1, kind: input, shape index: {}]   ;;  %s743_s2 = inlined_call_operand.vmem [shape: f32[1,128], index: 2, kind: input, shape index: {}]   ;;  %s744_s3 = inlined_call_operand.hbm [shape: f32[128,128], index: 3, kind: input, shape index: {}]   ;;  %s745_s4 = inlined_call_operand.vmem [shape: f32[1,128], index: 4, kind: input, shape index: {}]   ;;  %s746_s5 = inlined_call_operand.hbm [shape: f32[2,128], index: 5, kind: output, shape index: {}]  }
   0x1   :  { %11 = vsyncpa [#allocation6], 0 }
   0x2   :  { %12 = vsyncpa [#allocation4], 0  ;;  %s630_s18 = smov [#allocation5]   ;;  %s631_s20 = smov [#allocation2]  }
   0x3   :  { %s30_s19 = sshll.u32 %s630_s18, 4  ;;  %s18_s21 = sshll.u32 %s631_s20, 4  ;;  %s31_s19 = int_to_ptr.vmem [resolvable:$true] %s30_s19  ;;  %s19_s21 = int_to_ptr.vmem [resolvable:$true] %s18_s21 }
   0x4   :  { %s552_s22 = scalar_lea.vmem %s31_s19, 1024  ;;  %p557_p1 = scmp.lt.s32.totalorder %s31_s19, %s31_s19 }
   0x5   :  { %p553_p0 = scmp.ne.s32.totalorder %s31_s19, %s552_s22  ;;  %p558_p2 = scmp.lt.s32.totalorder %s552_s22, %s552_s22 }
   0x7   :  { %p559_p3 = por %p558_p2, %p557_p1 }
   0x9   :  { %p560_p4 = pnand %p559_p3, %p553_p0 }
   0xb   :  { %563 = shalt.err (!%p560_p4)
}
   0xc   :  { %s632_s23 = smov 128   ;;  %s633_s24 = smov 8  }
   0xd   :  { %36 = dma.hbm_to_vmem [thread:$0]  %s742_s1, 1024, %s31_s19, [#allocation6], %s632_s23, %s632_s23, %s633_s24  }
   0xe   :  { %s572_s27 = scalar_lea.vmem %s19_s21, 2048  ;;  %p577_p6 = scmp.lt.s32.totalorder %s19_s21, %s19_s21 }
   0xf   :  { %p573_p5 = scmp.ne.s32.totalorder %s19_s21, %s572_s27  ;;  %p578_p7 = scmp.lt.s32.totalorder %s572_s27, %s572_s27 }
  0x11   :  { %p579_p8 = por %p578_p7, %p577_p6 }
  0x13   :  { %p580_p9 = pnand %p579_p8, %p573_p5 }
  0x15   :  { %583 = shalt.err (!%p580_p9)
}
  0x16   :  { %24 = dma.hbm_to_vmem [thread:$0]  %s741_s0, 2048, %s19_s21, [#allocation3], %s632_s23, %s632_s23, %s633_s24  }
  0x17   :  { %s634_s30 = smov [#allocation7]  }
  0x18   :  { %s44_s6 = sshll.u32 %s634_s30, 4  ;;  %s45_s6 = int_to_ptr.vmem [resolvable:$true] %s44_s6 }
  0x19   :  { %s592_s7 = scalar_lea.vmem %s45_s6, 2048  ;;  %p597_p11 = scmp.lt.s32.totalorder %s45_s6, %s45_s6 }
  0x1a   :  { %p593_p10 = scmp.ne.s32.totalorder %s45_s6, %s592_s7  ;;  %p598_p12 = scmp.lt.s32.totalorder %s592_s7, %s592_s7 }
  0x1c   :  { %p599_p13 = por %p598_p12, %p597_p11 }
  0x1e   :  { %p600_p0 = pnand %p599_p13, %p593_p10 }
  0x20   :  { %603 = shalt.err (!%p600_p0)
}
  0x21   :  { %50 = dma.hbm_to_vmem [thread:$0]  %s744_s3, 2048, %s45_s6, [#allocation6], %s632_s23, %s632_s23, %s633_s24  }
  0x22   :  { %624 = dma.done.wait [#allocation3], 2048  }
  0x23   :  { %625 = vsyncadd [#allocation3], 4294965248 }
  0x24   :  { %626 = dma.done.wait [#allocation6], 3072  }
  0x25   :  { %627 = vsyncadd [#allocation6], 4294964224  ;;  %vm78_vm0 = vcmask 523264   ;;  %v70_v0 = vld [vmem:[#allocation2 + $0x40] sm:$0xff]  ;;  %v71_v2 = vld [vmem:[#allocation2 + $0x48] sm:$0xff]  ;;  %v635_v33 = vmov 0.0   ;;  %v174_v58 = vlaneseq }
  0x26   :  { %v62_v1 = vld [vmem:[#allocation2] sm:$0xff]  ;;  %v103_v3 = vsel %vm78_vm0, %v70_v0, 0.0  ;;  %v63_v5 = vld [vmem:[#allocation2 + $0x8] sm:$0xff]  ;;  %v106_v6 = vsel %vm78_vm0, %v71_v2, 0.0  ;;  %v72_v8 = vld [vmem:[#allocation2 + $0x50] sm:$0xff]  ;;  %482 = vmatprep.subr.mxu0 %v635_v33  ;;  %501 = vmatprep.subr.mxu1 %v635_v33  ;;  %vm636_vm1 = vmmov 0  }
  0x27   :  { %v79_v4 = vsel %vm78_vm0, %v62_v1, 0.0  ;;  %104 = vadd.xlane.f32.xlu1 %v103_v3  ;;  %v82_v7 = vsel %vm78_vm0, %v63_v5, 0.0  ;;  %v64_v9 = vld [vmem:[#allocation2 + $0x10] sm:$0xff]  ;;  %v109_v10 = vsel %vm78_vm0, %v72_v8, 0.0  ;;  %v73_v12 = vld [vmem:[#allocation2 + $0x58] sm:$0xff]  ;;  %v74_v16 = vld [vmem:[#allocation2 + $0x60] sm:$0xff]  ;;  %498 = vmatprep.mubr.msk.f32.mxu0 %vm636_vm1, %v635_v33 }
  0x28   :  { %80 = vadd.xlane.f32.xlu0 %v79_v4  ;;  %v85_v11 = vsel %vm78_vm0, %v64_v9, 0.0  ;;  %v65_v13 = vld [vmem:[#allocation2 + $0x18] sm:$0xff]  ;;  %v112_v14 = vsel %vm78_vm0, %v73_v12, 0.0  ;;  %v66_v17 = vld [vmem:[#allocation2 + $0x20] sm:$0xff]  ;;  %v115_v18 = vsel %vm78_vm0, %v74_v16, 0.0  ;;  %v75_v20 = vld [vmem:[#allocation2 + $0x68] sm:$0xff]  ;;  %533 = vmatprep.mubr.msk.f32.mxu1 %vm636_vm1, %v635_v33 }
  0x29   :  { %v88_v15 = vsel %vm78_vm0, %v65_v13, 0.0  ;;  %v91_v19 = vsel %vm78_vm0, %v66_v17, 0.0  ;;  %v67_v21 = vld [vmem:[#allocation2 + $0x28] sm:$0xff]  ;;  %v118_v22 = vsel %vm78_vm0, %v75_v20, 0.0  ;;  %v76_v24 = vld [vmem:[#allocation2 + $0x70] sm:$0xff]  ;;  %v77_v28 = vld [vmem:[#allocation2 + $0x78] sm:$0xff] }
  0x2a   :  { %v94_v23 = vsel %vm78_vm0, %v67_v21, 0.0  ;;  %v68_v25 = vld [vmem:[#allocation2 + $0x30] sm:$0xff]  ;;  %v121_v26 = vsel %vm78_vm0, %v76_v24, 0.0  ;;  %v69_v29 = vld [vmem:[#allocation2 + $0x38] sm:$0xff]  ;;  %v124_v30 = vsel %vm78_vm0, %v77_v28, 0.0  ;;  %v148_v35 = vld [vmem:[#allocation5 + $0x28] sm:$0xff] }
  0x2b   :  { %107 = vadd.xlane.f32.xlu1 %v106_v6  ;;  %v97_v27 = vsel %vm78_vm0, %v68_v25, 0.0  ;;  %v100_v31 = vsel %vm78_vm0, %v69_v29, 0.0  ;;  %v150_v32 = vld [vmem:[#allocation5 + $0x38] sm:$0xff]  ;;  %v149_v34 = vld [vmem:[#allocation5 + $0x30] sm:$0xff]  ;;  %v147_v36 = vld [vmem:[#allocation5 + $0x20] sm:$0xff]  ;;  %v175_v61 = vand.u32 127, %v174_v58 }
  0x2c   :  { %83 = vadd.xlane.f32.xlu0 %v82_v7  ;;  %483 = vmatpush3.msra.mxu0 %v150_v32  ;;  %v146_v37 = vld [vmem:[#allocation5 + $0x18] sm:$0xff]  ;;  %v145_v38 = vld [vmem:[#allocation5 + $0x10] sm:$0xff]  ;;  %v144_v39 = vld [vmem:[#allocation5 + $0x8] sm:$0xff]  ;;  %v177_v62 = vshrl.u32 %v174_v58, 7  ;;  %vm185_vm2 = vcmask 130112   ;;  %vm192_vm3 = vcmask 195712  }
  0x2d   :  { %484 = vmatprep.subr.mxu0 %v635_v33  ;;  %v143_v40 = vld [vmem:[#allocation5] sm:$0xff]  ;;  %v358_v41 = vld [vmem:[#allocation7 + $0x78] sm:$0xff]  ;;  %v357_v42 = vld [vmem:[#allocation7 + $0x70] sm:$0xff]  ;;  %v180_v1 = vadd.s32 4294967288, %v175_v61  ;;  %v187_v2 = vadd.s32 4294967280, %v175_v61  ;;  %v194_v3 = vadd.s32 4294967272, %v175_v61 }
  0x2e   :  { %485 = vmatpush3.msra.mxu0 %v149_v34  ;;  %502 = vmatpush3.msra.mxu1 %v358_v41  ;;  %v356_v43 = vld [vmem:[#allocation7 + $0x68] sm:$0xff]  ;;  %v355_v44 = vld [vmem:[#allocation7 + $0x60] sm:$0xff]  ;;  %v354_v45 = vld [vmem:[#allocation7 + $0x58] sm:$0xff]  ;;  %v201_v4 = vadd.s32 4294967264, %v175_v61  ;;  %v178_v5 = vsub.s32 %v175_v61, %v177_v62  ;;  %vm199_vm4 = vcmask 261312   ;;  %v215_v12 = vadd.s32 4294967248, %v175_v61 }
  0x2f   :  { %110 = vadd.xlane.f32.xlu1 %v109_v10  ;;  %486 = vmatprep.subr.mxu0 %v635_v33  ;;  %v353_v46 = vld [vmem:[#allocation7 + $0x50] sm:$0xff]  ;;  %v352_v47 = vld [vmem:[#allocation7 + $0x48] sm:$0xff]  ;;  %v351_v48 = vld [vmem:[#allocation7 + $0x40] sm:$0xff]  ;;  %v183_v8 = vsub.s32 %v180_v1, %v177_v62  ;;  %v190_v9 = vsub.s32 %v187_v2, %v177_v62  ;;  %v208_v10 = vadd.s32 4294967256, %v175_v61  ;;  %vm206_vm5 = vcmask 326912   ;;  %s637_s11 = smov [#allocation8]  }
  0x30   :  { %86 = vadd.xlane.f32.xlu0 %v85_v11  ;;  %487 = vmatpush3.msra.mxu0 %v148_v35  ;;  %v350_v49 = vld [vmem:[#allocation7 + $0x38] sm:$0xff]  ;;  %v349_v50 = vld [vmem:[#allocation7 + $0x30] sm:$0xff]  ;;  %v348_v51 = vld [vmem:[#allocation7 + $0x28] sm:$0xff]  ;;  %v197_v11 = vsub.s32 %v194_v3, %v177_v62  ;;  %vm213_vm6 = vcmask 392512   ;;  %v222_v28 = vadd.s32 4294967240, %v175_v61  ;;  %vm220_vm7 = vcmask 458112  }
  0x31   :  { %488 = vmatprep.subr.mxu0 %v635_v33  ;;  %503 = vmatprep.subr.mxu1 %v635_v33  ;;  %v347_v52 = vld [vmem:[#allocation7 + $0x20] sm:$0xff]  ;;  %v346_v53 = vld [vmem:[#allocation7 + $0x18] sm:$0xff]  ;;  %v211_v24 = vsub.s32 %v208_v10, %v177_v62  ;;  %vm227_vm8 = vcmask 523712   ;;  %vm268_vm9 = vcmask 1041409   ;;  %s443_s12 = sshll.u32 %s637_s11, 4  ;;  %s444_s12 = int_to_ptr.vmem [resolvable:$true] %s443_s12 }
  0x32   :  { %489 = vmatpush3.msra.mxu0 %v147_v36  ;;  %504 = vmatpush3.msra.mxu1 %v357_v42  ;;  %v343_v10 = vld [vmem:[#allocation7] sm:$0xff]  ;;  %s604_s13 = scalar_lea.vmem %s444_s12, 32  ;;  %p609_p2 = scmp.lt.s32.totalorder %s444_s12, %s444_s12 }
  0x33   :  { %113 = vadd.xlane.f32.xlu1 %v112_v14  ;;  %490 = vmatprep.subr.mxu0 %v635_v33  ;;  %p605_p1 = scmp.ne.s32.totalorder %s444_s12, %s604_s13  ;;  %p610_p3 = scmp.lt.s32.totalorder %s604_s13, %s604_s13 }
  0x34   :  { %89 = vadd.xlane.f32.xlu0 %v88_v15  ;;  %491 = vmatpush3.msra.mxu0 %v146_v37  ;;  %v204_v15 = vsub.s32 %v201_v4, %v177_v62 }
  0x35   :  { %492 = vmatprep.subr.mxu0 %v635_v33  ;;  %505 = vmatprep.subr.mxu1 %v635_v33  ;;  %p611_p4 = por %p610_p3, %p609_p2 }
  0x36   :  { %493 = vmatpush3.msra.mxu0 %v145_v38  ;;  %506 = vmatpush3.msra.mxu1 %v356_v43 }
  0x37   :  { %116 = vadd.xlane.f32.xlu1 %v115_v18  ;;  %494 = vmatprep.subr.mxu0 %v635_v33  ;;  %p612_p5 = pnand %p611_p4, %p605_p1 }
  0x38   :  { %92 = vadd.xlane.f32.xlu0 %v91_v19  ;;  %495 = vmatpush3.msra.mxu0 %v144_v39 }
  0x39   :  { %496 = vmatprep.subr.mxu0 %v635_v33  ;;  %507 = vmatprep.subr.mxu1 %v635_v33 }
  0x3a   :  { %497 = vmatpush3.msra.mxu0 %v143_v40  ;;  %508 = vmatpush3.msra.mxu1 %v355_v44 }
  0x3b   :  { %119 = vadd.xlane.f32.xlu1 %v118_v22  ;;  %509 = vmatprep.subr.mxu1 %v635_v33 }
  0x3c   :  { %95 = vadd.xlane.f32.xlu0 %v94_v23  ;;  %510 = vmatpush3.msra.mxu1 %v354_v45 }
  0x3d   :  { %511 = vmatprep.subr.mxu1 %v635_v33 }
  0x3e   :  { %512 = vmatpush3.msra.mxu1 %v353_v46  ;;  %v225_v46 = vsub.s32 %v222_v28, %v177_v62 }
  0x3f   :  { %122 = vadd.xlane.f32.xlu1 %v121_v26  ;;  %513 = vmatprep.subr.mxu1 %v635_v33 }
  0x40   :  { %98 = vadd.xlane.f32.xlu0 %v97_v27  ;;  %514 = vmatpush3.msra.mxu1 %v352_v47  ;;  %v218_v27 = vsub.s32 %v215_v12, %v177_v62 }
  0x41   :  { %515 = vmatprep.subr.mxu1 %v635_v33 }
  0x42   :  { %516 = vmatpush3.msra.mxu1 %v351_v48 }
  0x43   :  { %125 = vadd.xlane.f32.xlu1 %v124_v30  ;;  %517 = vmatprep.subr.mxu1 %v635_v33 }
  0x44   :  { %101 = vadd.xlane.f32.xlu0 %v100_v31  ;;  %518 = vmatpush3.msra.mxu1 %v350_v49 }
  0x45   :  { %519 = vmatprep.subr.mxu1 %v635_v33 }
  0x46   :  { %520 = vmatpush3.msra.mxu1 %v349_v50 }
  0x47   :  { %521 = vmatprep.subr.mxu1 %v635_v33 }
  0x48   :  { %522 = vmatpush3.msra.mxu1 %v348_v51 }
  0x49   :  { %523 = vmatprep.subr.mxu1 %v635_v33 }
  0x4a   :  { %524 = vmatpush3.msra.mxu1 %v347_v52 }
  0x4b   :  { %525 = vmatprep.subr.mxu1 %v635_v33 }
  0x4c   :  { %526 = vmatpush3.msra.mxu1 %v346_v53 }
  0x4d   :  { %527 = vmatprep.subr.mxu1 %v635_v33 }
  0xb0   :  { %v105_v54 = vpop.xlane.xlu1 %104 }
  0xb1   :  { %v81_v55 = vpop.xlane.xlu0 %80  ;;  %v135_v16 = vmul.f32 0.015625, %v105_v54 }
  0xb2   :  { %v127_v17 = vmul.f32 0.015625, %v81_v55 }
  0xb3   :  { %v232_v34 = vrot.slane %v135_v16, %v178_v5  ;;  %v455_v16 = vld [vmem:[%s745_s4] ss:$0 sm:$0xff] }
  0xb4   :  { %v108_v56 = vpop.xlane.xlu1 %107  ;;  %v179_v35 = vrot.slane %v127_v17, %v178_v5 }
  0xb5   :  { %v84_v57 = vpop.xlane.xlu0 %83  ;;  %v136_v13 = vmul.f32 0.015625, %v108_v56 }
  0xb6   :  { %v128_v14 = vmul.f32 0.015625, %v84_v57 }
  0xb7   :  { %v236_v29 = vrot.slane %v136_v13, %v183_v8 }
  0xb8   :  { %v111_v59 = vpop.xlane.xlu1 %110  ;;  %v184_v30 = vrot.slane %v128_v14, %v183_v8  ;;  %v345_v8 = vld [vmem:[#allocation7 + $0x10] sm:$0xff] }
  0xb9   :  { %v87_v60 = vpop.xlane.xlu0 %86  ;;  %v137_v18 = vmul.f32 0.015625, %v111_v59  ;;  %v237_v47 = vsel %vm185_vm2, %v236_v29, %v232_v34  ;;  %528 = vmatpush3.msra.mxu1 %v345_v8 }
  0xba   :  { %v129_v19 = vmul.f32 0.015625, %v87_v60  ;;  %v186_v48 = vsel %vm185_vm2, %v184_v30, %v179_v35  ;;  %529 = vmatprep.subr.mxu1 %v635_v33 }
  0xbb   :  { %v241_v36 = vrot.slane %v137_v18, %v190_v9 }
  0xbc   :  { %v114_v63 = vpop.xlane.xlu1 %113  ;;  %v191_v37 = vrot.slane %v129_v19, %v190_v9  ;;  %v344_v9 = vld [vmem:[#allocation7 + $0x8] sm:$0xff] }
  0xbd   :  { %v90_v0 = vpop.xlane.xlu0 %89  ;;  %v138_v22 = vmul.f32 0.015625, %v114_v63  ;;  %v242_v51 = vsel %vm192_vm3, %v241_v36, %v237_v47  ;;  %530 = vmatpush3.msra.mxu1 %v344_v9 }
  0xbe   :  { %v130_v23 = vmul.f32 0.015625, %v90_v0  ;;  %v193_v52 = vsel %vm192_vm3, %v191_v37, %v186_v48  ;;  %531 = vmatprep.subr.mxu1 %v635_v33 }
  0xbf   :  { %v246_v40 = vrot.slane %v138_v22, %v197_v11  ;;  %532 = vmatpush3.msra.mxu1 %v343_v10 }
  0xc0   :  { %v117_v6 = vpop.xlane.xlu1 %116  ;;  %v198_v41 = vrot.slane %v130_v23, %v197_v11  ;;  %v453_v11 = vld [vmem:[%s743_s2] ss:$0 sm:$0xff] }
  0xc1   :  { %v93_v7 = vpop.xlane.xlu0 %92  ;;  %v139_v25 = vmul.f32 0.015625, %v117_v6  ;;  %v247_v57 = vsel %vm199_vm4, %v246_v40, %v242_v51 }
  0xc2   :  { %v131_v26 = vmul.f32 0.015625, %v93_v7  ;;  %v200_v58 = vsel %vm199_vm4, %v198_v41, %v193_v52 }
  0xc3   :  { %v251_v44 = vrot.slane %v139_v25, %v204_v15 }
  0xc4   :  { %v120_v20 = vpop.xlane.xlu1 %119  ;;  %v205_v45 = vrot.slane %v131_v26, %v204_v15 }
  0xc5   :  { %v96_v21 = vpop.xlane.xlu0 %95  ;;  %v140_v31 = vmul.f32 0.015625, %v120_v20  ;;  %v252_v61 = vsel %vm206_vm5, %v251_v44, %v247_v57 }
  0xc6   :  { %v132_v32 = vmul.f32 0.015625, %v96_v21  ;;  %v207_v62 = vsel %vm206_vm5, %v205_v45, %v200_v58 }
  0xc7   :  { %v256_v49 = vrot.slane %v140_v31, %v211_v24 }
  0xc8   :  { %v123_v38 = vpop.xlane.xlu1 %122  ;;  %v212_v50 = vrot.slane %v132_v32, %v211_v24 }
  0xc9   :  { %v99_v39 = vpop.xlane.xlu0 %98  ;;  %v141_v42 = vmul.f32 0.015625, %v123_v38  ;;  %v257_v63 = vsel %vm213_vm6, %v256_v49, %v252_v61 }
  0xca   :  { %v133_v43 = vmul.f32 0.015625, %v99_v39  ;;  %v214_v0 = vsel %vm213_vm6, %v212_v50, %v207_v62 }
  0xcb   :  { %v261_v53 = vrot.slane %v141_v42, %v218_v27 }
  0xcc   :  { %v219_v54 = vrot.slane %v133_v43, %v218_v27  ;;  %v126_v55 = vpop.xlane.xlu1 %125 }
  0xcd   :  { %v102_v56 = vpop.xlane.xlu0 %101  ;;  %v142_v59 = vmul.f32 0.015625, %v126_v55  ;;  %v262_v3 = vsel %vm220_vm7, %v261_v53, %v257_v63 }
  0xce   :  { %v134_v60 = vmul.f32 0.015625, %v102_v56  ;;  %v221_v4 = vsel %vm220_vm7, %v219_v54, %v214_v0 }
  0xcf   :  { %v266_v1 = vrot.slane %v142_v59, %v225_v46 }
  0xd0   :  { %v226_v2 = vrot.slane %v134_v60, %v225_v46 }
  0xd1   :  { %v267_v6 = vsel %vm227_vm8, %v266_v1, %v262_v3 }
  0xd2   :  { %v228_v5 = vsel %vm227_vm8, %v226_v2, %v221_v4 }
  0xd3   :  { %v269_v7 = vsel %vm268_vm9, %v267_v6, %v228_v5 }
  0xd4   :  { %499 = vmatmul.mubr.msk.f32.vlgmr.msra.gmra.mxu0 %vm78_vm0, %v269_v7 }
 0x194   :  { %v338_v12 = vpop.f32.mrf.mxu0 }
 0x195   :  { %v339_v13 = vadd.f32 %v453_v11, %v338_v12 }
 0x196   :  { %v500_v14 = vpop.f32.mrf.mxu0 }
 0x197   :  { %v342_v15 = vmax.f32 %v339_v13, 0.0 }
 0x199   :  { %534 = vmatmul.mubr.f32.vlgmr.msra.gmra.mxu1 %v342_v15 }
 0x259   :  { %v432_v17 = vpop.f32.mrf.mxu1 }
 0x25a   :  { %v433_v18 = vadd.f32 %v455_v16, %v432_v17 }
 0x25b   :  { %v535_v33 = vpop.f32.mrf.mxu1 }
 0x25c   :  { %436 = vst [vmem:[#allocation8] sm:$0x3] %v433_v18 }
 0x25d   :  { %615 = shalt.err (!%p612_p5)
}
 0x25e   :  { %446 = dma.vmem_to_hbm [thread:$0]  %s444_s12, 32, %s746_s5, [#allocation4]  }
 0x25f   :  { %628 = dma.done.wait [#allocation4], 32  }
 0x260   :  { %629 = vsyncadd [#allocation4], 4294967264 }
 0x261   :  { %450 = vsyncpa [#allocation3], 1 }
 0x262   :  { %451 = vsyncpa [#allocation6], 1 }
 0x263   :  { %452 = vsyncpa [#allocation4], 1 }

</bundles_post_ra>
